<compile_context>
chip_gen: v7x
topology: tpu7x:2x2x1
jax: 0.10.0
libtpu: 0.0.40
codegen_flags: <defaults>
</compile_context>

<pallas_src>
import functools

import jax
import jax.numpy as jnp
from jax.experimental import pallas as pl
from jax.experimental.pallas import tpu as pltpu

_LANE = 128


def _vmem_capacity_bytes():
    """Physical VMEM per TensorCore, with a conservative fallback."""
    try:
        info = pltpu.get_tpu_info()
        for attr in ("vmem_capacity_bytes", "vmem_bytes", "vmem_size_bytes"):
            v = getattr(info, attr, None)
            if v:
                return int(v)
    except Exception:
        pass
    return 64 * 1024 * 1024  # v7x per-TC size; safe lower bound for v5e/v6e too


def _auto_tile_n():
    """Largest batch tile whose per-step working set comfortably fits scoped VMEM.

    Per-lane f32 footprint (everything sublane-padded to 8 rows = 32 B/lane per
    value): in + out double buffers (4 x 32 B) plus h1/h2/acc temporaries
    (~4-6 x 32 B) ~= 0.25-0.3 KB/lane.  Budget 384 B/lane against 1/8 of physical
    VMEM for ample headroom under the raised vmem_limit_bytes.
    """
    budget = _vmem_capacity_bytes() // 8
    tile = (budget // 384) // _LANE * _LANE
    return int(max(1024, min(tile, 131072)))


def _affine_t(w, b, act):
    """(out, T) = W(out, in) @ act(in, T) + b(out, 1), done on the VPU.

    Contraction dims are 2 or 8, so a short unrolled chain of broadcast
    multiply-adds over lane-dense (out, T) values beats pushing tiny padded
    tiles through the MXU (no push/drain latency, no (8,128) padding waste).
    """
    k_in = w.shape[1]
    acc = w[:, 0:1] * act[0:1, :]                 # (out,1)*(1,T) -> (out,T)
    for k in range(1, k_in):                      # static unroll, k_in <= 8
        acc = acc + w[:, k:k + 1] * act[k:k + 1, :]
    return acc + b                                # bias broadcasts over lanes
    # TODO(synk): stage h1/h2 in VMEM scratch and use stride-0 sublane-broadcast
    # loads (h_ref[pl.ds(k, rows, stride=0)]) to move the act-row broadcasts off
    # the XLU once stride=0 dynamic slices are confirmed in the installed jax.


def _mlp_kernel(xt_ref, w1_ref, b1_ref, w2_ref, b2_ref, w3_ref, b3_ref, ot_ref,
                *, use_mxu):
    xt = xt_ref[...]                                                 # (F_in, T)
    h1 = jnp.maximum(_affine_t(w1_ref[...], b1_ref[...], xt), 0.0)   # (H, T)
    if use_mxu:
        # Offload the 8x8 layer to the (otherwise idle) MXU.
        pre2 = jnp.dot(w2_ref[...], h1,
                       preferred_element_type=jnp.float32) + b2_ref[...]
    else:
        pre2 = _affine_t(w2_ref[...], b2_ref[...], h1)
    h2 = jnp.maximum(pre2, 0.0)                                      # (H, T)
    out = _affine_t(w3_ref[...], b3_ref[...], h2)                    # (O, T)
    ot_ref[...] = out.astype(ot_ref.dtype)


def blob_model_forward(x, params, *, tile_n=None, use_mxu_for_hidden=False,
                       return_transposed=False):
    """x: (N, input_features) f32. params: PyTorch-layout w{1,2,3} (out, in), b{1,2,3} (out, 1).

    Returns (N, output_features), or (output_features, N) if return_transposed=True
    (skips the wrapper-side output transpose for layout-flexible consumers).
    """
    w1, b1 = params["w1"], params["b1"]
    w2, b2 = params["w2"], params["b2"]
    w3, b3 = params["w3"], params["b3"]

    n, f_in = x.shape
    h1d, h2d, f_out = w1.shape[0], w2.shape[0], w3.shape[0]

    # Batch lives on the lane axis: every activation / store is a full-width vreg.
    xt = x.T                                                         # (f_in, n)

    if tile_n is None:
        tile_n = _auto_tile_n()
    else:
        tile_n = max(_LANE, (int(tile_n) // _LANE) * _LANE)

    if n <= _LANE:
        tile = n                                  # single full-extent block (legal)
    elif n <= tile_n:
        # Still emit >=2 lane-dense blocks so v7x megacore can use both cores.
        tile = (-(-n // 2) + _LANE - 1) // _LANE * _LANE
    else:
        tile = tile_n
    grid = (pl.cdiv(n, tile),)                    # ragged edge masked by Pallas

    vmem_limit = int(min(_vmem_capacity_bytes() // 2, 96 * 1024 * 1024))

    flops = 2 * n * (f_in * h1d + h1d * h2d + h2d * f_out)
    bytes_accessed = 4 * (
        n * (f_in + f_out)
        + w1.size + b1.size + w2.size + b2.size + w3.size + b3.size
    )

    def full_spec(a):
        # Whole (tiny) weight/bias resident in VMEM for every grid step.
        return pl.BlockSpec(a.shape, lambda i: (0, 0))

    out_t = pl.pallas_call(
        functools.partial(_mlp_kernel, use_mxu=use_mxu_for_hidden),
        out_shape=jax.ShapeDtypeStruct((f_out, n), jnp.float32),
        grid_spec=pltpu.PrefetchScalarGridSpec(
            num_scalar_prefetch=0,
            grid=grid,
            in_specs=[
                pl.BlockSpec((f_in, tile), lambda i: (0, i)),   # x^T batch tile
                full_spec(w1), full_spec(b1),
                full_spec(w2), full_spec(b2),
                full_spec(w3), full_spec(b3),
            ],
            out_specs=pl.BlockSpec((f_out, tile), lambda i: (0, i)),
        ),
        compiler_params=pltpu.CompilerParams(
            dimension_semantics=("parallel",),                  # megacore on v7x
            vmem_limit_bytes=vmem_limit,
        ),
        cost_estimate=pl.CostEstimate(
            flops=flops, transcendentals=0, bytes_accessed=bytes_accessed),
    )(xt, w1, b1, w2, b2, w3, b3)

    return out_t if return_transposed else out_t.T


def init_params(key, input_features, output_features, hidden_units=8):
    """Mirrors nn.Linear init: uniform(+-1/sqrt(fan_in)), weight stored (out, in)."""
    def linear_init(k, fan_in, fan_out):
        kw, kb = jax.random.split(k)
        bound = 1.0 / jnp.sqrt(jnp.float32(fan_in))
        w = jax.random.uniform(kw, (fan_out, fan_in), jnp.float32, -bound, bound)
        b = jax.random.uniform(kb, (fan_out, 1), jnp.float32, -bound, bound)
        return w, b

    k1, k2, k3 = jax.random.split(key, 3)
    w1, b1 = linear_init(k1, input_features, hidden_units)
    w2, b2 = linear_init(k2, hidden_units, hidden_units)
    w3, b3 = linear_init(k3, hidden_units, output_features)
    return {"w1": w1, "b1": b1, "w2": w2, "b2": b2, "w3": w3, "b3": b3}


def _reference_forward(x, p):
    h1 = jnp.maximum(x @ p["w1"].T + p["b1"].T, 0.0)
    h2 = jnp.maximum(h1 @ p["w2"].T + p["b2"].T, 0.0)
    return h2 @ p["w3"].T + p["b3"].T


if __name__ == "__main__":
    # Blob-classification shapes: 2 input features, 8 hidden units, 4 classes.
    batch = 250              # deliberately not a multiple of 128 (ragged edge path)
    input_features = 2
    hidden_units = 8
    output_features = 4

    key = jax.random.PRNGKey(0)
    k_x, k_p = jax.random.split(key)
    x = jax.random.normal(k_x, (batch, input_features), dtype=jnp.float32)
    params = init_params(k_p, input_features, output_features, hidden_units)
    ref = _reference_forward(x, params)

    # 1) Default path: auto (VMEM-sized) tile, >=2 grid blocks, VPU-only body.
    out = jax.block_until_ready(blob_model_forward(x, params))
    assert out.shape == (batch, output_features)
    assert jnp.allclose(out, ref, atol=1e-5, rtol=1e-5)

    # 2) Transposed-output fast path (skips the wrapper-side output transpose).
    out_cn = jax.block_until_ready(
        blob_model_forward(x, params, return_transposed=True))
    assert out_cn.shape == (output_features, batch)
    assert jnp.allclose(out_cn.T, ref, atol=1e-5, rtol=1e-5)

    # 3) Larger ragged grid (tile=256) + MXU offload of the 8x8 hidden layer.
    #    Looser tolerance: the MXU runs f32 as bf16 passes under default precision.
    x2 = jax.random.normal(jax.random.PRNGKey(1), (1000, input_features),
                           dtype=jnp.float32)
    ref2 = _reference_forward(x2, params)
    out2 = jax.block_until_ready(
        blob_model_forward(x2, params, tile_n=256, use_mxu_for_hidden=True))
    assert out2.shape == (1000, output_features)
    assert jnp.allclose(out2, ref2, atol=1e-2, rtol=1e-2)

    print("KERNEL_OK")
</pallas_src>

<mosaic_0001>
module attributes {stable_mosaic.version = 11 : i64} {
  func.func @_mlp_kernel(%arg0: i32, %arg1: memref<2x128xf32, #tpu.memory_space<vmem>>, %arg2: memref<8x2xf32, #tpu.memory_space<vmem>>, %arg3: memref<8x1xf32, #tpu.memory_space<vmem>>, %arg4: memref<8x8xf32, #tpu.memory_space<vmem>>, %arg5: memref<8x1xf32, #tpu.memory_space<vmem>>, %arg6: memref<4x8xf32, #tpu.memory_space<vmem>>, %arg7: memref<4x1xf32, #tpu.memory_space<vmem>>, %arg8: memref<4x128xf32, #tpu.memory_space<vmem>>) attributes {dimension_semantics = [#tpu.dimension_semantics<parallel>], iteration_bounds = array<i64: 2>, scalar_prefetch = 0 : i64, scratch_operands = 0 : i64, tpu.core_type = #tpu.core_type<tc>, window_params = [{transform_indices = @transform_0, window_bounds = array<i64: 2, 128>}, {pipeline_mode = #tpu.pipeline_mode<synchronous>, transform_indices = @transform_1, window_bounds = array<i64: 8, 2>}, {pipeline_mode = #tpu.pipeline_mode<synchronous>, transform_indices = @transform_2, window_bounds = array<i64: 8, 1>}, {pipeline_mode = #tpu.pipeline_mode<synchronous>, transform_indices = @transform_3, window_bounds = array<i64: 8, 8>}, {pipeline_mode = #tpu.pipeline_mode<synchronous>, transform_indices = @transform_4, window_bounds = array<i64: 8, 1>}, {pipeline_mode = #tpu.pipeline_mode<synchronous>, transform_indices = @transform_5, window_bounds = array<i64: 4, 8>}, {pipeline_mode = #tpu.pipeline_mode<synchronous>, transform_indices = @transform_6, window_bounds = array<i64: 4, 1>}, {transform_indices = @transform_7, window_bounds = array<i64: 4, 128>}]} {
    %c0 = arith.constant 0 : index
    %c0_0 = arith.constant 0 : index
    %0 = vector.load %arg1[%c0, %c0_0] : memref<2x128xf32, #tpu.memory_space<vmem>>, vector<2x128xf32>
    %c0_1 = arith.constant 0 : index
    %c0_2 = arith.constant 0 : index
    %1 = vector.load %arg2[%c0_1, %c0_2] : memref<8x2xf32, #tpu.memory_space<vmem>>, vector<8x2xf32>
    %c0_3 = arith.constant 0 : index
    %c0_4 = arith.constant 0 : index
    %2 = vector.load %arg3[%c0_3, %c0_4] : memref<8x1xf32, #tpu.memory_space<vmem>>, vector<8x1xf32>
    %3 = vector.extract_strided_slice %1 {offsets = [0, 0], sizes = [8, 1], strides = [1, 1]} : vector<8x2xf32> to vector<8x1xf32>
    %4 = vector.extract_strided_slice %0 {offsets = [0, 0], sizes = [1, 128], strides = [1, 1]} : vector<2x128xf32> to vector<1x128xf32>
    %5 = vector.broadcast %3 : vector<8x1xf32> to vector<8x128xf32>
    %6 = vector.broadcast %4 : vector<1x128xf32> to vector<8x128xf32>
    %7 = arith.mulf %5, %6 : vector<8x128xf32>
    %8 = vector.extract_strided_slice %1 {offsets = [0, 1], sizes = [8, 1], strides = [1, 1]} : vector<8x2xf32> to vector<8x1xf32>
    %9 = vector.extract_strided_slice %0 {offsets = [1, 0], sizes = [1, 128], strides = [1, 1]} : vector<2x128xf32> to vector<1x128xf32>
    %10 = vector.broadcast %8 : vector<8x1xf32> to vector<8x128xf32>
    %11 = vector.broadcast %9 : vector<1x128xf32> to vector<8x128xf32>
    %12 = arith.mulf %10, %11 : vector<8x128xf32>
    %13 = arith.addf %7, %12 : vector<8x128xf32>
    %14 = vector.broadcast %2 : vector<8x1xf32> to vector<8x128xf32>
    %15 = arith.addf %13, %14 : vector<8x128xf32>
    %cst = arith.constant 0.000000e+00 : f32
    %16 = vector.broadcast %cst : f32 to vector<8x128xf32>
    %17 = arith.maximumf %15, %16 : vector<8x128xf32>
    %c0_5 = arith.constant 0 : index
    %c0_6 = arith.constant 0 : index
    %18 = vector.load %arg4[%c0_5, %c0_6] : memref<8x8xf32, #tpu.memory_space<vmem>>, vector<8x8xf32>
    %c0_7 = arith.constant 0 : index
    %c0_8 = arith.constant 0 : index
    %19 = vector.load %arg5[%c0_7, %c0_8] : memref<8x1xf32, #tpu.memory_space<vmem>>, vector<8x1xf32>
    %20 = vector.extract_strided_slice %18 {offsets = [0, 0], sizes = [8, 1], strides = [1, 1]} : vector<8x8xf32> to vector<8x1xf32>
    %21 = vector.extract_strided_slice %17 {offsets = [0, 0], sizes = [1, 128], strides = [1, 1]} : vector<8x128xf32> to vector<1x128xf32>
    %22 = vector.broadcast %20 : vector<8x1xf32> to vector<8x128xf32>
    %23 = vector.broadcast %21 : vector<1x128xf32> to vector<8x128xf32>
    %24 = arith.mulf %22, %23 : vector<8x128xf32>
    %25 = vector.extract_strided_slice %18 {offsets = [0, 1], sizes = [8, 1], strides = [1, 1]} : vector<8x8xf32> to vector<8x1xf32>
    %26 = vector.extract_strided_slice %17 {offsets = [1, 0], sizes = [1, 128], strides = [1, 1]} : vector<8x128xf32> to vector<1x128xf32>
    %27 = vector.broadcast %25 : vector<8x1xf32> to vector<8x128xf32>
    %28 = vector.broadcast %26 : vector<1x128xf32> to vector<8x128xf32>
    %29 = arith.mulf %27, %28 : vector<8x128xf32>
    %30 = arith.addf %24, %29 : vector<8x128xf32>
    %31 = vector.extract_strided_slice %18 {offsets = [0, 2], sizes = [8, 1], strides = [1, 1]} : vector<8x8xf32> to vector<8x1xf32>
    %32 = vector.extract_strided_slice %17 {offsets = [2, 0], sizes = [1, 128], strides = [1, 1]} : vector<8x128xf32> to vector<1x128xf32>
    %33 = vector.broadcast %31 : vector<8x1xf32> to vector<8x128xf32>
    %34 = vector.broadcast %32 : vector<1x128xf32> to vector<8x128xf32>
    %35 = arith.mulf %33, %34 : vector<8x128xf32>
    %36 = arith.addf %30, %35 : vector<8x128xf32>
    %37 = vector.extract_strided_slice %18 {offsets = [0, 3], sizes = [8, 1], strides = [1, 1]} : vector<8x8xf32> to vector<8x1xf32>
    %38 = vector.extract_strided_slice %17 {offsets = [3, 0], sizes = [1, 128], strides = [1, 1]} : vector<8x128xf32> to vector<1x128xf32>
    %39 = vector.broadcast %37 : vector<8x1xf32> to vector<8x128xf32>
    %40 = vector.broadcast %38 : vector<1x128xf32> to vector<8x128xf32>
    %41 = arith.mulf %39, %40 : vector<8x128xf32>
    %42 = arith.addf %36, %41 : vector<8x128xf32>
    %43 = vector.extract_strided_slice %18 {offsets = [0, 4], sizes = [8, 1], strides = [1, 1]} : vector<8x8xf32> to vector<8x1xf32>
    %44 = vector.extract_strided_slice %17 {offsets = [4, 0], sizes = [1, 128], strides = [1, 1]} : vector<8x128xf32> to vector<1x128xf32>
    %45 = vector.broadcast %43 : vector<8x1xf32> to vector<8x128xf32>
    %46 = vector.broadcast %44 : vector<1x128xf32> to vector<8x128xf32>
    %47 = arith.mulf %45, %46 : vector<8x128xf32>
    %48 = arith.addf %42, %47 : vector<8x128xf32>
    %49 = vector.extract_strided_slice %18 {offsets = [0, 5], sizes = [8, 1], strides = [1, 1]} : vector<8x8xf32> to vector<8x1xf32>
    %50 = vector.extract_strided_slice %17 {offsets = [5, 0], sizes = [1, 128], strides = [1, 1]} : vector<8x128xf32> to vector<1x128xf32>
    %51 = vector.broadcast %49 : vector<8x1xf32> to vector<8x128xf32>
    %52 = vector.broadcast %50 : vector<1x128xf32> to vector<8x128xf32>
    %53 = arith.mulf %51, %52 : vector<8x128xf32>
    %54 = arith.addf %48, %53 : vector<8x128xf32>
    %55 = vector.extract_strided_slice %18 {offsets = [0, 6], sizes = [8, 1], strides = [1, 1]} : vector<8x8xf32> to vector<8x1xf32>
    %56 = vector.extract_strided_slice %17 {offsets = [6, 0], sizes = [1, 128], strides = [1, 1]} : vector<8x128xf32> to vector<1x128xf32>
    %57 = vector.broadcast %55 : vector<8x1xf32> to vector<8x128xf32>
    %58 = vector.broadcast %56 : vector<1x128xf32> to vector<8x128xf32>
    %59 = arith.mulf %57, %58 : vector<8x128xf32>
    %60 = arith.addf %54, %59 : vector<8x128xf32>
    %61 = vector.extract_strided_slice %18 {offsets = [0, 7], sizes = [8, 1], strides = [1, 1]} : vector<8x8xf32> to vector<8x1xf32>
    %62 = vector.extract_strided_slice %17 {offsets = [7, 0], sizes = [1, 128], strides = [1, 1]} : vector<8x128xf32> to vector<1x128xf32>
    %63 = vector.broadcast %61 : vector<8x1xf32> to vector<8x128xf32>
    %64 = vector.broadcast %62 : vector<1x128xf32> to vector<8x128xf32>
    %65 = arith.mulf %63, %64 : vector<8x128xf32>
    %66 = arith.addf %60, %65 : vector<8x128xf32>
    %67 = vector.broadcast %19 : vector<8x1xf32> to vector<8x128xf32>
    %68 = arith.addf %66, %67 : vector<8x128xf32>
    %cst_9 = arith.constant 0.000000e+00 : f32
    %69 = vector.broadcast %cst_9 : f32 to vector<8x128xf32>
    %70 = arith.maximumf %68, %69 : vector<8x128xf32>
    %c0_10 = arith.constant 0 : index
    %c0_11 = arith.constant 0 : index
    %71 = vector.load %arg6[%c0_10, %c0_11] : memref<4x8xf32, #tpu.memory_space<vmem>>, vector<4x8xf32>
    %c0_12 = arith.constant 0 : index
    %c0_13 = arith.constant 0 : index
    %72 = vector.load %arg7[%c0_12, %c0_13] : memref<4x1xf32, #tpu.memory_space<vmem>>, vector<4x1xf32>
    %73 = vector.extract_strided_slice %71 {offsets = [0, 0], sizes = [4, 1], strides = [1, 1]} : vector<4x8xf32> to vector<4x1xf32>
    %74 = vector.extract_strided_slice %70 {offsets = [0, 0], sizes = [1, 128], strides = [1, 1]} : vector<8x128xf32> to vector<1x128xf32>
    %75 = vector.broadcast %73 : vector<4x1xf32> to vector<4x128xf32>
    %76 = vector.broadcast %74 : vector<1x128xf32> to vector<4x128xf32>
    %77 = arith.mulf %75, %76 : vector<4x128xf32>
    %78 = vector.extract_strided_slice %71 {offsets = [0, 1], sizes = [4, 1], strides = [1, 1]} : vector<4x8xf32> to vector<4x1xf32>
    %79 = vector.extract_strided_slice %70 {offsets = [1, 0], sizes = [1, 128], strides = [1, 1]} : vector<8x128xf32> to vector<1x128xf32>
    %80 = vector.broadcast %78 : vector<4x1xf32> to vector<4x128xf32>
    %81 = vector.broadcast %79 : vector<1x128xf32> to vector<4x128xf32>
    %82 = arith.mulf %80, %81 : vector<4x128xf32>
    %83 = arith.addf %77, %82 : vector<4x128xf32>
    %84 = vector.extract_strided_slice %71 {offsets = [0, 2], sizes = [4, 1], strides = [1, 1]} : vector<4x8xf32> to vector<4x1xf32>
    %85 = vector.extract_strided_slice %70 {offsets = [2, 0], sizes = [1, 128], strides = [1, 1]} : vector<8x128xf32> to vector<1x128xf32>
    %86 = vector.broadcast %84 : vector<4x1xf32> to vector<4x128xf32>
    %87 = vector.broadcast %85 : vector<1x128xf32> to vector<4x128xf32>
    %88 = arith.mulf %86, %87 : vector<4x128xf32>
    %89 = arith.addf %83, %88 : vector<4x128xf32>
    %90 = vector.extract_strided_slice %71 {offsets = [0, 3], sizes = [4, 1], strides = [1, 1]} : vector<4x8xf32> to vector<4x1xf32>
    %91 = vector.extract_strided_slice %70 {offsets = [3, 0], sizes = [1, 128], strides = [1, 1]} : vector<8x128xf32> to vector<1x128xf32>
    %92 = vector.broadcast %90 : vector<4x1xf32> to vector<4x128xf32>
    %93 = vector.broadcast %91 : vector<1x128xf32> to vector<4x128xf32>
    %94 = arith.mulf %92, %93 : vector<4x128xf32>
    %95 = arith.addf %89, %94 : vector<4x128xf32>
    %96 = vector.extract_strided_slice %71 {offsets = [0, 4], sizes = [4, 1], strides = [1, 1]} : vector<4x8xf32> to vector<4x1xf32>
    %97 = vector.extract_strided_slice %70 {offsets = [4, 0], sizes = [1, 128], strides = [1, 1]} : vector<8x128xf32> to vector<1x128xf32>
    %98 = vector.broadcast %96 : vector<4x1xf32> to vector<4x128xf32>
    %99 = vector.broadcast %97 : vector<1x128xf32> to vector<4x128xf32>
    %100 = arith.mulf %98, %99 : vector<4x128xf32>
    %101 = arith.addf %95, %100 : vector<4x128xf32>
    %102 = vector.extract_strided_slice %71 {offsets = [0, 5], sizes = [4, 1], strides = [1, 1]} : vector<4x8xf32> to vector<4x1xf32>
    %103 = vector.extract_strided_slice %70 {offsets = [5, 0], sizes = [1, 128], strides = [1, 1]} : vector<8x128xf32> to vector<1x128xf32>
    %104 = vector.broadcast %102 : vector<4x1xf32> to vector<4x128xf32>
    %105 = vector.broadcast %103 : vector<1x128xf32> to vector<4x128xf32>
    %106 = arith.mulf %104, %105 : vector<4x128xf32>
    %107 = arith.addf %101, %106 : vector<4x128xf32>
    %108 = vector.extract_strided_slice %71 {offsets = [0, 6], sizes = [4, 1], strides = [1, 1]} : vector<4x8xf32> to vector<4x1xf32>
    %109 = vector.extract_strided_slice %70 {offsets = [6, 0], sizes = [1, 128], strides = [1, 1]} : vector<8x128xf32> to vector<1x128xf32>
    %110 = vector.broadcast %108 : vector<4x1xf32> to vector<4x128xf32>
    %111 = vector.broadcast %109 : vector<1x128xf32> to vector<4x128xf32>
    %112 = arith.mulf %110, %111 : vector<4x128xf32>
    %113 = arith.addf %107, %112 : vector<4x128xf32>
    %114 = vector.extract_strided_slice %71 {offsets = [0, 7], sizes = [4, 1], strides = [1, 1]} : vector<4x8xf32> to vector<4x1xf32>
    %115 = vector.extract_strided_slice %70 {offsets = [7, 0], sizes = [1, 128], strides = [1, 1]} : vector<8x128xf32> to vector<1x128xf32>
    %116 = vector.broadcast %114 : vector<4x1xf32> to vector<4x128xf32>
    %117 = vector.broadcast %115 : vector<1x128xf32> to vector<4x128xf32>
    %118 = arith.mulf %116, %117 : vector<4x128xf32>
    %119 = arith.addf %113, %118 : vector<4x128xf32>
    %120 = vector.broadcast %72 : vector<4x1xf32> to vector<4x128xf32>
    %121 = arith.addf %119, %120 : vector<4x128xf32>
    %c0_14 = arith.constant 0 : index
    %c0_15 = arith.constant 0 : index
    %122 = vector.load %arg8[%c0_14, %c0_15] : memref<4x128xf32, #tpu.memory_space<vmem>>, vector<4x128xf32>
    tpu.vector_store %arg8[%c0_14, %c0_15], %121 {strides = array<i32>} : memref<4x128xf32, #tpu.memory_space<vmem>>, vector<4x128xf32>,
    return
  }
  func.func @transform_0(%arg0: i32) -> (i32, i32) {
    %c0_i32 = arith.constant 0 : i32
    %c0_i32_0 = arith.constant 0 : i32
    return %c0_i32, %arg0 : i32, i32
  }
  func.func @transform_1(%arg0: i32) -> (i32, i32) {
    %c0_i32 = arith.constant 0 : i32
    %c0_i32_0 = arith.constant 0 : i32
    %c0_i32_1 = arith.constant 0 : i32
    return %c0_i32, %c0_i32_0 : i32, i32
  }
  func.func @transform_2(%arg0: i32) -> (i32, i32) {
    %c0_i32 = arith.constant 0 : i32
    %c0_i32_0 = arith.constant 0 : i32
    %c0_i32_1 = arith.constant 0 : i32
    return %c0_i32, %c0_i32_0 : i32, i32
  }
  func.func @transform_3(%arg0: i32) -> (i32, i32) {
    %c0_i32 = arith.constant 0 : i32
    %c0_i32_0 = arith.constant 0 : i32
    %c0_i32_1 = arith.constant 0 : i32
    return %c0_i32, %c0_i32_0 : i32, i32
  }
  func.func @transform_4(%arg0: i32) -> (i32, i32) {
    %c0_i32 = arith.constant 0 : i32
    %c0_i32_0 = arith.constant 0 : i32
    %c0_i32_1 = arith.constant 0 : i32
    return %c0_i32, %c0_i32_0 : i32, i32
  }
  func.func @transform_5(%arg0: i32) -> (i32, i32) {
    %c0_i32 = arith.constant 0 : i32
    %c0_i32_0 = arith.constant 0 : i32
    %c0_i32_1 = arith.constant 0 : i32
    return %c0_i32, %c0_i32_0 : i32, i32
  }
  func.func @transform_6(%arg0: i32) -> (i32, i32) {
    %c0_i32 = arith.constant 0 : i32
    %c0_i32_0 = arith.constant 0 : i32
    %c0_i32_1 = arith.constant 0 : i32
    return %c0_i32, %c0_i32_0 : i32, i32
  }
  func.func @transform_7(%arg0: i32) -> (i32, i32) {
    %c0_i32 = arith.constant 0 : i32
    %c0_i32_0 = arith.constant 0 : i32
    return %c0_i32, %arg0 : i32, i32
  }
}

</mosaic_0001>

<bundles_post_ra>
// kernel: tpu_custom_call.1
= control target key start
LH: loop header
LB: loop body
LE: loop exit
PB: predicated region body
PF: predicated region fallthrough
CT: control target
= control target key end

     0   :  { %12 = vsyncpa [#allocation3], 0  ;;  %s873_s0 = inlined_call_operand.vmem [shape: f32[2,250], index: 0, kind: input, shape index: {}]   ;;  %s874_s1 = inlined_call_operand.vmem [shape: f32[8,2], index: 1, kind: input, shape index: {}]   ;;  %s875_s2 = inlined_call_operand.vmem [shape: f32[8,1], index: 2, kind: input, shape index: {}]   ;;  %s876_s3 = inlined_call_operand.vmem [shape: f32[8,8], index: 3, kind: input, shape index: {}]   ;;  %s877_s4 = inlined_call_operand.vmem [shape: f32[8,1], index: 4, kind: input, shape index: {}]   ;;  %s878_s5 = inlined_call_operand.vmem [shape: f32[4,8], index: 5, kind: input, shape index: {}]   ;;  %s879_s6 = inlined_call_operand.vmem [shape: f32[4,1], index: 6, kind: input, shape index: {}]   ;;  %s880_s7 = inlined_call_operand.hbm [shape: f32[4,250], index: 7, kind: output, shape index: {}]  }
   0x1   :  { %14 = vsyncpa [#allocation3 + $0x1], 0  ;;  %s745_s24 = smov 0   ;;  %s747_s25 = smov 0  }
   0x2   :  { %s749_s26 = smov 0   ;;  %s751_s27 = smov 0  }
   0x3 LB: > { %s766_s28 = sadd.s32 4294967295, %s694_s27   ;;  %s555_s29 = sadd.s32 4294967294, %s694_s27   ;;  %s694_s27 = sphi %s751_s27, %s886_s27   ;;  %s690_s26 = sphi %s749_s26, %s885_s26   ;;  %s686_s25 = sphi %s747_s25, %s884_s25   ;;  %s682_s24 = sphi %s745_s24, %s883_s24  }
   0x4   : > { %s770_s30 = sadd.s32 1, %s694_s27   ;;  %s179_s8 = sadd.s32 1, %s690_s26 }
   0x5   : > { %s176_s9 = ssub.s32 %s694_s27, %s770_s30  ;;  %p189_p0 = scmp.ne.s32.totalorder %s690_s26, %s686_s25 }
   0x6   : > { %p177_p1 = scmp.eq.s32.totalorder %s176_s9, 0  ;;  %p190_p2 = scmp.eq.s32.totalorder %s766_s28, 1 }
   0x7   : > { %p195_p3 = scmp.ne.s32.totalorder %s686_s25, %s682_s24  ;;  %p196_p4 = scmp.eq.s32.totalorder %s555_s29, 1 }
   0x8   : > { %s781_s10 = scalar_select %p177_p1, %s690_s26, %s179_s8  }
   0x9   : > { %p783_p5 = por %p190_p2, %p189_p0  ;;  %p787_p6 = por %p196_p4, %p195_p3 }
   0xa   : > { %p558_p7 = scmp.ge.s32.totalorder %s694_s27, 1  ;;  %p239_p8 = scmp.lt.s32.totalorder %s694_s27, 3 }
   0xc   : > { %p240_p9 = pnand %p558_p7, %p239_p8 }
   0xd   : > { %v276_v0 = vld [vmem:[%s875_s2] sm:$0xff] (!%p240_p9)  ;;  %v696_v2 = vmov (!%p240_p9), 0   ;;  %v697_v4 = vmov (!%p240_p9), 1   ;;  %v698_v5 = vmov (!%p240_p9), 2   ;;  %v699_v6 = vmov (!%p240_p9), 3   ;;  %p270_p10 = scmp.lt.s32.totalorder (!%p240_p9), %s766_s28, 1 }
   0xe   : > { %243 = sbr.rel (%p240_p9) target bundleno = 222 (0xde), region = 48  ;;  %v275_v1 = vld [vmem:[%s874_s1] sm:$0xff] (!%p240_p9)  ;;  %614 = vset.pattern.permute.xlu1 (!%p240_p9), %v696_v2  ;;  %612 = vset.pattern.permute.xlu0 (!%p240_p9), %v696_v2  ;;  %v700_v7 = vmov (!%p240_p9), 5   ;;  %v701_v9 = vmov (!%p240_p9), 4   ;;  %v702_v11 = vmov (!%p240_p9), 6   ;;  %v703_v12 = vmov (!%p240_p9), 7  }
   0xf   : > { %299 = vperm.xlu1 (!%p240_p9), %614, %v276_v0   ;;  %279 = vperm.xlu0 (!%p240_p9), %612, %v275_v1   ;;  %v304_v3 = vld [vmem:[%s876_s3] sm:$0xff] (!%p240_p9)  ;;  %v282_v14 = vlaneseq (!%p240_p9)  ;;  %s267_s16 = sand.u32 (!%p240_p9), 1, %s686_s25   ;;  %s562_s18 = sshll.u32 (!%p240_p9), %s766_s28, 6 }
  0x10   : > { %v305_v8 = vld [vmem:[%s877_s4] sm:$0xff] (!%p240_p9)  ;;  %s559_s17 = sshll.u32 (!%p240_p9), %s267_s16, 2  ;;  %s831_s23 = scalar_lea.hbm (!%p240_p9), %s880_s7, %s562_s18 }
  0x11   : > { %v393_v10 = vld [vmem:[%s878_s5] sm:$0xf] (!%p240_p9)  ;;  %v813_v15 = vshrl.u32 (!%p240_p9), %v282_v14, 7  ;;  %s269_s19 = scalar_lea.vmem (!%p240_p9), [#allocation2], %s559_s17  ;;  %s483_s29 = scalar_lea.sflag (!%p240_p9), [#allocation3], %s267_s16 }
  0x12   : > { %v394_v13 = vld [vmem:[%s879_s6] sm:$0xf] (!%p240_p9)  ;;  %s496_s20 = sshll.u32 (!%p240_p9), %s269_s19, 4  ;;  %s833_s20 = int_to_ptr.vmem [resolvable:$true] %s496_s20 }
  0x13   : > { %308 = vperm.xlu1 (!%p240_p9), %614, %v304_v3   ;;  %613 = vset.pattern.permute.xlu0 (!%p240_p9), %v697_v4  ;;  %v284_v16 = vsub.s32 (!%p240_p9), 0, %v813_v15  ;;  %v293_v18 = vsub.s32 (!%p240_p9), 1, %v813_v15  ;;  %v332_v30 = vsub.s32 (!%p240_p9), 2, %v813_v15  ;;  %v342_v32 = vsub.s32 (!%p240_p9), 3, %v813_v15 }
  0x14   : > { %288 = vperm.xlu0 (!%p240_p9), %613, %v275_v1   ;;  %v362_v38 = vsub.s32 (!%p240_p9), 5, %v813_v15  ;;  %v352_v42 = vsub.s32 (!%p240_p9), 4, %v813_v15  ;;  %v372_v46 = vsub.s32 (!%p240_p9), 6, %v813_v15  ;;  %v382_v58 = vsub.s32 (!%p240_p9), 7, %v813_v15 }
  0x15   : > { %s271_s8 = scalar_select %p270_p10, %s766_s28, 1 }
  0x16   : > { %s704_s28 = smov [#allocation2]  }
  0x17   : > { %615 = vset.pattern.permute.xlu1 %v697_v4  ;;  %s560_s9 = sshll.u32 %s271_s8, 1  ;;  %s632_s8 = scalar_lea.vmem %s833_s20, 64 }
  0x18   : > { %317 = vperm.xlu1 %615, %v304_v3   ;;  %616 = vset.pattern.permute.xlu0 %v698_v5  ;;  %s273_s15 = scalar_lea.vmem %s873_s0, %s560_s9  ;;  %p633_p11 = scmp.ne.s32.totalorder %s833_s20, %s632_s8 }
  0x19   : > { %327 = vperm.xlu0 %616, %v304_v3   ;;  %v274_v17 = vld [vmem:[%s273_s15] sm:$0x3]  ;;  %s636_s9 = sshll.u32 %s704_s28, 4  ;;  %s637_s9 = int_to_ptr.vmem [resolvable:$false] %s636_s9 }
  0x1a   : > { %v285_v21 = vrot.slane %v274_v17, %v284_v16  ;;  %v294_v22 = vrot.slane %v274_v17, %v293_v18  ;;  %p634_p12 = pnand %p633_p11, %p783_p5  ;;  %s638_s13 = scalar_lea.vmem %s637_s9, 128 }
  0x1b   : > { %p639_p0 = scmp.lt.s32.totalorder %s833_s20, %s637_s9  ;;  %p640_p1 = scmp.lt.s32.totalorder %s638_s13, %s632_s8 }
  0x1c   : > { %617 = vset.pattern.permute.xlu1 %v699_v6  ;;  %p635_p13 = pneg %p634_p12 }
  0x1d   : > { %337 = vperm.xlu1 %617, %v304_v3   ;;  %619 = vset.pattern.permute.xlu0 %v700_v7  ;;  %p641_p2 = por %p640_p1, %p639_p0 }
  0x1e   : > { %357 = vperm.xlu0 %619, %v304_v3  }
  0x1f   : > { %p642_p3 = pnand %p641_p2, %p635_p13 }
  0x21   : > { %618 = vset.pattern.permute.xlu1 %v701_v9 }
  0x22   : > { %347 = vperm.xlu1 %618, %v304_v3   ;;  %622 = vset.pattern.permute.xlu0 %v696_v2 }
  0x23   : > { %388 = vperm.xlu0 %622, %v305_v8  }
  0x26   : > { %620 = vset.pattern.permute.xlu1 %v702_v11 }
  0x27   : > { %367 = vperm.xlu1 %620, %v304_v3   ;;  %625 = vset.pattern.permute.xlu0 %v698_v5 }
  0x28   : > { %416 = vperm.xlu0 %625, %v393_v10  }
  0x2b   : > { %621 = vset.pattern.permute.xlu1 %v703_v12 }
  0x2c   : > { %377 = vperm.xlu1 %621, %v304_v3   ;;  %628 = vset.pattern.permute.xlu0 %v700_v7 }
  0x2d   : > { %446 = vperm.xlu0 %628, %v393_v10  }
  0x30   : > { %623 = vset.pattern.permute.xlu1 %v696_v2 }
  0x31   : > { %397 = vperm.xlu1 %623, %v393_v10   ;;  %631 = vset.pattern.permute.xlu0 %v696_v2 }
  0x32   : > { %477 = vperm.xlu0 %631, %v394_v13  }
  0x35   : > { %624 = vset.pattern.permute.xlu1 %v697_v4 }
  0x36   : > { %406 = vperm.xlu1 %624, %v393_v10  }
  0x3a   : > { %626 = vset.pattern.permute.xlu1 %v699_v6 }
  0x3b   : > { %426 = vperm.xlu1 %626, %v393_v10  }
  0x3f   : > { %627 = vset.pattern.permute.xlu1 %v701_v9 }
  0x40   : > { %436 = vperm.xlu1 %627, %v393_v10  }
  0x44   : > { %629 = vset.pattern.permute.xlu1 %v702_v11 }
  0x45   : > { %456 = vperm.xlu1 %629, %v393_v10  }
  0x49   : > { %630 = vset.pattern.permute.xlu1 %v703_v12 }
  0x4a   : > { %466 = vperm.xlu1 %630, %v393_v10  }
  0x8e   : > { %v300_v19 = vpop.permute.xlu1 %299  ;;  %v280_v20 = vpop.permute.xlu0 %279 }
  0x8f   : > { %v286_v23 = vmul.f32 %v285_v21, %v280_v20 }
  0x92   : > { %v309_v24 = vpop.permute.xlu1 %308 }
  0x93   : > { %v289_v25 = vpop.permute.xlu0 %288 }
  0x94   : > { %v295_v26 = vmul.f32 %v294_v22, %v289_v25 }
  0x96   : > { %v296_v27 = vadd.f32 %v295_v26, %v286_v23 }
  0x97   : > { %v318_v28 = vpop.permute.xlu1 %317 }
  0x98   : > { %v302_v29 = vadd.f32 %v300_v19, %v296_v27  ;;  %v328_v37 = vpop.permute.xlu0 %327 }
  0x9a   : > { %v303_v31 = vmax.f32 %v302_v29, 0.0 }
  0x9c   : > { %v314_v33 = vrot.slane %v303_v31, %v284_v16  ;;  %v323_v34 = vrot.slane %v303_v31, %v293_v18  ;;  %v333_v35 = vrot.slane %v303_v31, %v332_v30  ;;  %v338_v36 = vpop.permute.xlu1 %337  ;;  %v343_v41 = vrot.slane %v303_v31, %v342_v32 }
  0x9d   : > { %v363_v49 = vrot.slane %v303_v31, %v362_v38  ;;  %v353_v50 = vrot.slane %v303_v31, %v352_v42  ;;  %v358_v51 = vpop.permute.xlu0 %357  ;;  %v373_v57 = vrot.slane %v303_v31, %v372_v46  ;;  %v383_v61 = vrot.slane %v303_v31, %v382_v58 }
  0x9e   : > { %v315_v39 = vmul.f32 %v314_v33, %v309_v24  ;;  %v324_v40 = vmul.f32 %v323_v34, %v318_v28  ;;  %v334_v44 = vmul.f32 %v333_v35, %v328_v37  ;;  %v344_v48 = vmul.f32 %v343_v41, %v338_v36 }
  0x9f   : > { %v364_v54 = vmul.f32 %v363_v49, %v358_v51 }
  0xa0   : > { %v325_v43 = vadd.f32 %v324_v40, %v315_v39 }
  0xa1   : > { %v348_v45 = vpop.permute.xlu1 %347 }
  0xa2   : > { %v335_v47 = vadd.f32 %v334_v44, %v325_v43  ;;  %v354_v53 = vmul.f32 %v353_v50, %v348_v45  ;;  %v389_v2 = vpop.permute.xlu0 %388 }
  0xa4   : > { %v345_v52 = vadd.f32 %v344_v48, %v335_v47 }
  0xa6   : > { %v355_v55 = vadd.f32 %v354_v53, %v345_v52  ;;  %v368_v56 = vpop.permute.xlu1 %367 }
  0xa7   : > { %v374_v60 = vmul.f32 %v373_v57, %v368_v56  ;;  %v417_v13 = vpop.permute.xlu0 %416 }
  0xa8   : > { %v365_v59 = vadd.f32 %v364_v54, %v355_v55 }
  0xaa   : > { %v375_v63 = vadd.f32 %v374_v60, %v365_v59 }
  0xab   : > { %v378_v62 = vpop.permute.xlu1 %377 }
  0xac   : > { %v384_v0 = vmul.f32 %v383_v61, %v378_v62 }
  0xae   : > { %v385_v1 = vadd.f32 %v384_v0, %v375_v63 }
  0xb0   : > { %v391_v3 = vadd.f32 %v389_v2, %v385_v1  ;;  %v398_v4 = vpop.permute.xlu1 %397 }
  0xb2   : > { %v392_v5 = vmax.f32 %v391_v3, 0.0 }
  0xb4   : > { %v403_v6 = vrot.slane %v392_v5, %v284_v16  ;;  %v412_v7 = vrot.slane %v392_v5, %v293_v18  ;;  %v422_v10 = vrot.slane %v392_v5, %v332_v30  ;;  %v432_v17 = vrot.slane %v392_v5, %v342_v32  ;;  %v447_v16 = vpop.permute.xlu0 %446 }
  0xb5   : > { %v407_v8 = vpop.permute.xlu1 %406  ;;  %v442_v21 = vrot.slane %v392_v5, %v352_v42  ;;  %v452_v23 = vrot.slane %v392_v5, %v362_v38  ;;  %v462_v28 = vrot.slane %v392_v5, %v372_v46  ;;  %v472_v31 = vrot.slane %v392_v5, %v382_v58 }
  0xb6   : > { %v404_v9 = vmul.f32 %v403_v6, %v398_v4  ;;  %v413_v11 = vmul.f32 %v412_v7, %v407_v8  ;;  %v423_v14 = vmul.f32 %v422_v10, %v417_v13 }
  0xb7   : > { %v453_v26 = vmul.f32 %v452_v23, %v447_v16 }
  0xb8   : > { %v414_v12 = vadd.f32 %v413_v11, %v404_v9  ;;  %v478_v35 = vpop.permute.xlu0 %477 }
  0xba   : > { %v427_v15 = vpop.permute.xlu1 %426  ;;  %v424_v19 = vadd.f32 %v423_v14, %v414_v12 }
  0xbb   : > { %v433_v20 = vmul.f32 %v432_v17, %v427_v15 }
  0xbd   : > { %v434_v24 = vadd.f32 %v433_v20, %v424_v19 }
  0xbf   : > { %v437_v22 = vpop.permute.xlu1 %436 }
  0xc0   : > { %v443_v25 = vmul.f32 %v442_v21, %v437_v22 }
  0xc2   : > { %v444_v18 = vadd.f32 %v443_v25, %v434_v24 }
  0xc4   : > { %v457_v27 = vpop.permute.xlu1 %456  ;;  %v454_v29 = vadd.f32 %v453_v26, %v444_v18 }
  0xc5   : > { %v463_v30 = vmul.f32 %v462_v28, %v457_v27 }
  0xc7   : > { %v464_v33 = vadd.f32 %v463_v30, %v454_v29 }
  0xc9   : > { %v467_v32 = vpop.permute.xlu1 %466 }
  0xca   : > { %v473_v34 = vmul.f32 %v472_v31, %v467_v32 }
  0xcc   : > { %v474_v36 = vadd.f32 %v473_v34, %v464_v33 }
  0xce   : > { %v480_v37 = vadd.f32 %v478_v35, %v474_v36 }
  0xd0   : > { %481 = vst [vmem:[%s269_s19] sm:$0xf] %v480_v37 }
  0xd1   : > { %645 = shalt.err (!%p642_p3)
}
  0xd2   : > { %s646_s14 = scalar_lea.hbm %s831_s23, 64  ;;  %s650_s17 = scalar_lea.hbm %s880_s7, 128 }
  0xd3   : > { %p647_p4 = scmp.ne.s32.totalorder %s831_s23, %s646_s14  ;;  %p651_p9 = scmp.lt.u32.totalorder %s831_s23, %s880_s7 }
  0xd4   : > { %p652_p10 = scmp.lt.u32.totalorder %s650_s17, %s646_s14  ;;  %p654_p12 = scmp.lt.u32.totalorder %s646_s14, %s831_s23 }
  0xd5   : > { %p648_p7 = pnand %p647_p4, %p783_p5 }
  0xd6   : > { %p653_p11 = por %p652_p10, %p651_p9 }
  0xd7   : > { %p649_p8 = pneg %p648_p7 }
  0xd8   : > { %p655_p13 = por %p654_p12, %p653_p11 }
  0xda   : > { %p656_p0 = pnand %p655_p13, %p649_p8 }
  0xdc   : > { %659 = shalt.err (!%p656_p0)
}
  0xdd   : > { %565 = dma.vmem_to_hbm [thread:$0]  (%p783_p5), %s833_s20, 64, %s831_s23, %s483_s29  }
  0xde PF: > { %p571_p1 = scmp.ge.s32.totalorder %s694_s27, 2  ;;  %s508_s21 = sand.u32 1, %s682_s24  }
  0xdf   : > { %s509_s22 = scalar_lea.sflag [#allocation3], %s508_s21 }
  0xe0   : > { %p568_p2 = pnand %p571_p1, %p787_p6 }
  0xe2   : > { %677 = dma.done.wait (!%p568_p2), %s509_s22, 64  }
  0xe3   : > { %679 = vsyncadd (!%p568_p2), %s509_s22, 4294967232  ;;  %p17_p3 = scmp.ge.s32.totalorder %s770_s30, 4   ;;  %s883_s24 = smov %s686_s25 }
  0xe4   : > { %s884_s25 = smov %s690_s26  ;;  %s885_s26 = smov %s781_s10 }
  0xe5   : > { %s886_s27 = smov %s770_s30  ;;  %19 = sbr.rel (!%p17_p3) target bundleno = 3 (0x3), region = 83 }
  0xec   :  { %514 = vsyncpa [#allocation3], 1 }
  0xed   :  { %516 = vsyncpa [#allocation3 + $0x1], 1 }

</bundles_post_ra>
